<compile_context>
chip_gen: v6e
topology: v6e:2x2x1
jax: 0.10.0
libtpu: 0.0.40
codegen_flags: <defaults>
</compile_context>

<pallas_src>
import jax
import jax.numpy as jnp
from jax.experimental import pallas as pl
from jax.experimental.pallas import tpu as pltpu

IN_FEATURES = 784
HIDDEN = 10
OUT_FEATURES = 10
IN_PAD = 896   # 784 rounded up to a multiple of 128 (lane-aligned K, contiguous DMA)
N_PAD = 128    # hidden/output width padded to one full 128-lane vreg


def _mlp_kernel(x_ref, w1_ref, b1_ref, w2_ref, b2_ref, o_ref):
    # fc1: (TM, 896) bf16 @ (896, 128) bf16 -> f32 accumulate on the MXU.
    h = jnp.dot(x_ref[...], w1_ref[...], preferred_element_type=jnp.float32)
    h = jnp.maximum(h + b1_ref[...], 0.0)  # bias + ReLU in f32 on the VPU
    # fc2: (TM, 128) f32 @ (128, 128) f32; zero-padded rows/cols keep math exact.
    y = jnp.dot(h, w2_ref[...], preferred_element_type=jnp.float32)
    o_ref[...] = (y + b2_ref[...]).astype(o_ref.dtype)


def _round_up(n, m):
    return ((n + m - 1) // m) * m


def simple_net_forward(x, w1, b1, w2, b2, *, max_tile=512):
    """SimpleNet forward pass.

    x:  (B, 784) float32
    w1: (10, 784), b1: (10,)   -- torch nn.Linear(784, 10) layout
    w2: (10, 10),  b2: (10,)   -- torch nn.Linear(10, 10) layout
    Returns (B, 10) float32 = fc2(relu(fc1(x))).
    """
    B = x.shape[0]

    # Batch tile: sublane-aligned, capped so double-buffered tiles stay small
    # (2 x TM x 896 x 2B (bf16 in) + 2 x TM x 128 x 4B (f32 out) ~ 2.3 MiB at TM=512).
    tm = min(max_tile, _round_up(B, 8))
    b_pad = _round_up(B, tm)
    grid = (b_pad // tm,)

    # ---- host-side prep: pad to lane-dense shapes, cast the big streams to bf16 ----
    x_p = jnp.zeros((b_pad, IN_PAD), jnp.bfloat16).at[:B, :IN_FEATURES].set(
        x.astype(jnp.bfloat16))
    w1_p = jnp.zeros((IN_PAD, N_PAD), jnp.bfloat16).at[:IN_FEATURES, :HIDDEN].set(
        w1.T.astype(jnp.bfloat16))
    b1_p = jnp.zeros((1, N_PAD), jnp.float32).at[0, :HIDDEN].set(b1.astype(jnp.float32))
    w2_p = jnp.zeros((N_PAD, N_PAD), jnp.float32).at[:HIDDEN, :OUT_FEATURES].set(
        w2.T.astype(jnp.float32))
    b2_p = jnp.zeros((1, N_PAD), jnp.float32).at[0, :OUT_FEATURES].set(
        b2.astype(jnp.float32))

    bytes_accessed = (
        x_p.size * 2                 # bf16 activations read
        + w1_p.size * 2              # bf16 fc1 weights
        + (w2_p.size + b1_p.size + b2_p.size) * 4
        + b_pad * N_PAD * 4          # f32 output write
    )
    cost = pl.CostEstimate(
        flops=2 * b_pad * (IN_PAD * N_PAD + N_PAD * N_PAD),
        transcendentals=0,
        bytes_accessed=bytes_accessed,
    )

    out_padded = pl.pallas_call(
        _mlp_kernel,
        out_shape=jax.ShapeDtypeStruct((b_pad, N_PAD), jnp.float32),
        grid_spec=pltpu.PrefetchScalarGridSpec(
            num_scalar_prefetch=0,
            grid=grid,
            in_specs=[
                pl.BlockSpec((tm, IN_PAD), lambda i: (i, 0)),      # streamed x tile
                pl.BlockSpec((IN_PAD, N_PAD), lambda i: (0, 0)),   # resident weights
                pl.BlockSpec((1, N_PAD), lambda i: (0, 0)),
                pl.BlockSpec((N_PAD, N_PAD), lambda i: (0, 0)),
                pl.BlockSpec((1, N_PAD), lambda i: (0, 0)),
            ],
            out_specs=pl.BlockSpec((tm, N_PAD), lambda i: (i, 0)),  # lane-dense store
        ),
        compiler_params=pltpu.CompilerParams(
            dimension_semantics=("parallel",),       # shard batch tiles across TCs (v7x)
            vmem_limit_bytes=32 * 1024 * 1024,       # fits v5e/v6e/v7x scoped VMEM
        ),
        cost_estimate=cost,
    )(x_p, w1_p, b1_p, w2_p, b2_p)

    return out_padded[:B, :OUT_FEATURES]


def _init_params(key):
    # Deterministic init mimicking nn.Linear's uniform(-1/sqrt(fan_in), 1/sqrt(fan_in)).
    k1, k2, k3, k4 = jax.random.split(key, 4)
    bound1 = 1.0 / jnp.sqrt(784.0)
    bound2 = 1.0 / jnp.sqrt(10.0)
    w1 = jax.random.uniform(k1, (10, 784), jnp.float32, -bound1, bound1)  # torch layout
    b1 = jax.random.uniform(k2, (10,), jnp.float32, -bound1, bound1)
    w2 = jax.random.uniform(k3, (10, 10), jnp.float32, -bound2, bound2)
    b2 = jax.random.uniform(k4, (10,), jnp.float32, -bound2, bound2)
    return w1, b1, w2, b2


if __name__ == "__main__":
    key = jax.random.PRNGKey(0)
    kx, kp = jax.random.split(key)
    B = 8
    x = jax.random.normal(kx, (B, 784), jnp.float32)
    w1, b1, w2, b2 = _init_params(kp)

    out = simple_net_forward(x, w1, b1, w2, b2)
    out = jax.block_until_ready(out)

    # Reference in plain JAX (same math as the torch forward), f32.
    ref = jnp.maximum(x @ w1.T + b1, 0.0) @ w2.T + b2
    assert out.shape == (B, 10)
    # bf16 input/weight streams => ~1e-2-level agreement vs the pure-f32 reference.
    assert jnp.allclose(out, ref, atol=2e-2, rtol=2e-2), (
        float(jnp.max(jnp.abs(out - ref))))

    print("KERNEL_OK")
</pallas_src>

<mosaic_0001>
module attributes {stable_mosaic.version = 11 : i64} {
  func.func @_mlp_kernel(%arg0: i32, %arg1: memref<8x896xbf16, #tpu.memory_space<vmem>>, %arg2: memref<896x128xbf16, #tpu.memory_space<vmem>>, %arg3: memref<1x128xf32, #tpu.memory_space<vmem>>, %arg4: memref<128x128xf32, #tpu.memory_space<vmem>>, %arg5: memref<1x128xf32, #tpu.memory_space<vmem>>, %arg6: memref<8x128xf32, #tpu.memory_space<vmem>>) attributes {dimension_semantics = [#tpu.dimension_semantics<parallel>], iteration_bounds = array<i64: 1>, scalar_prefetch = 0 : i64, scratch_operands = 0 : i64, tpu.core_type = #tpu.core_type<tc>, window_params = [{transform_indices = @transform_0, window_bounds = array<i64: 8, 896>}, {pipeline_mode = #tpu.pipeline_mode<synchronous>, transform_indices = @transform_1, window_bounds = array<i64: 896, 128>}, {pipeline_mode = #tpu.pipeline_mode<synchronous>, transform_indices = @transform_2, window_bounds = array<i64: 1, 128>}, {pipeline_mode = #tpu.pipeline_mode<synchronous>, transform_indices = @transform_3, window_bounds = array<i64: 128, 128>}, {pipeline_mode = #tpu.pipeline_mode<synchronous>, transform_indices = @transform_4, window_bounds = array<i64: 1, 128>}, {transform_indices = @transform_5, window_bounds = array<i64: 8, 128>}]} {
    %c0 = arith.constant 0 : index
    %c0_0 = arith.constant 0 : index
    %0 = vector.load %arg1[%c0, %c0_0] : memref<8x896xbf16, #tpu.memory_space<vmem>>, vector<8x896xbf16>
    %c0_1 = arith.constant 0 : index
    %c0_2 = arith.constant 0 : index
    %1 = vector.load %arg2[%c0_1, %c0_2] : memref<896x128xbf16, #tpu.memory_space<vmem>>, vector<896x128xbf16>
    %cst = arith.constant dense<0.000000e+00> : vector<8x128xf32>
    %2 = tpu.matmul %0, %1, %cst {dimension_numbers = #tpu.dot_dimension_numbers<[1], [0], [0], [1], [0, 0, 1, 1], [], []>} : vector<8x896xbf16>, vector<896x128xbf16>, vector<8x128xf32> -> vector<8x128xf32>
    %c0_3 = arith.constant 0 : index
    %c0_4 = arith.constant 0 : index
    %3 = vector.load %arg3[%c0_3, %c0_4] : memref<1x128xf32, #tpu.memory_space<vmem>>, vector<1x128xf32>
    %4 = vector.broadcast %3 : vector<1x128xf32> to vector<8x128xf32>
    %5 = arith.addf %2, %4 : vector<8x128xf32>
    %cst_5 = arith.constant 0.000000e+00 : f32
    %6 = vector.broadcast %cst_5 : f32 to vector<8x128xf32>
    %7 = arith.maximumf %5, %6 : vector<8x128xf32>
    %c0_6 = arith.constant 0 : index
    %c0_7 = arith.constant 0 : index
    %8 = vector.load %arg4[%c0_6, %c0_7] : memref<128x128xf32, #tpu.memory_space<vmem>>, vector<128x128xf32>
    %cst_8 = arith.constant dense<0.000000e+00> : vector<8x128xf32>
    %9 = tpu.matmul %7, %8, %cst_8 {dimension_numbers = #tpu.dot_dimension_numbers<[1], [0], [0], [1], [0, 0, 1, 1], [], []>} : vector<8x128xf32>, vector<128x128xf32>, vector<8x128xf32> -> vector<8x128xf32>
    %c0_9 = arith.constant 0 : index
    %c0_10 = arith.constant 0 : index
    %10 = vector.load %arg5[%c0_9, %c0_10] : memref<1x128xf32, #tpu.memory_space<vmem>>, vector<1x128xf32>
    %11 = vector.broadcast %10 : vector<1x128xf32> to vector<8x128xf32>
    %12 = arith.addf %9, %11 : vector<8x128xf32>
    %c0_11 = arith.constant 0 : index
    %c0_12 = arith.constant 0 : index
    %13 = vector.load %arg6[%c0_11, %c0_12] : memref<8x128xf32, #tpu.memory_space<vmem>>, vector<8x128xf32>
    tpu.vector_store %arg6[%c0_11, %c0_12], %12 {strides = array<i32>} : memref<8x128xf32, #tpu.memory_space<vmem>>, vector<8x128xf32>,
    return
  }
  func.func @transform_0(%arg0: i32) -> (i32, i32) {
    %c0_i32 = arith.constant 0 : i32
    %c0_i32_0 = arith.constant 0 : i32
    return %arg0, %c0_i32 : i32, i32
  }
  func.func @transform_1(%arg0: i32) -> (i32, i32) {
    %c0_i32 = arith.constant 0 : i32
    %c0_i32_0 = arith.constant 0 : i32
    %c0_i32_1 = arith.constant 0 : i32
    return %c0_i32, %c0_i32_0 : i32, i32
  }
  func.func @transform_2(%arg0: i32) -> (i32, i32) {
    %c0_i32 = arith.constant 0 : i32
    %c0_i32_0 = arith.constant 0 : i32
    %c0_i32_1 = arith.constant 0 : i32
    return %c0_i32, %c0_i32_0 : i32, i32
  }
  func.func @transform_3(%arg0: i32) -> (i32, i32) {
    %c0_i32 = arith.constant 0 : i32
    %c0_i32_0 = arith.constant 0 : i32
    %c0_i32_1 = arith.constant 0 : i32
    return %c0_i32, %c0_i32_0 : i32, i32
  }
  func.func @transform_4(%arg0: i32) -> (i32, i32) {
    %c0_i32 = arith.constant 0 : i32
    %c0_i32_0 = arith.constant 0 : i32
    %c0_i32_1 = arith.constant 0 : i32
    return %c0_i32, %c0_i32_0 : i32, i32
  }
  func.func @transform_5(%arg0: i32) -> (i32, i32) {
    %c0_i32 = arith.constant 0 : i32
    %c0_i32_0 = arith.constant 0 : i32
    return %arg0, %c0_i32 : i32, i32
  }
}

</mosaic_0001>

<bundles_post_ra>
// kernel: tpu_custom_call.1
= control target key start
LH: loop header
LB: loop body
LE: loop exit
PB: predicated region body
PF: predicated region fallthrough
CT: control target
= control target key end

     0   :  { %10 = vsyncpa [#allocation3], 0  ;;  %s1273_s0 = inlined_call_operand.hbm [shape: bf16[8,896], index: 0, kind: input, shape index: {}]   ;;  %s1274_s1 = inlined_call_operand.hbm [shape: bf16[896,128], index: 1, kind: input, shape index: {}]   ;;  %s1275_s2 = inlined_call_operand.vmem [shape: f32[1,128], index: 2, kind: input, shape index: {}]   ;;  %s1276_s3 = inlined_call_operand.hbm [shape: f32[128,128], index: 3, kind: input, shape index: {}]   ;;  %s1277_s4 = inlined_call_operand.vmem [shape: f32[1,128], index: 4, kind: input, shape index: {}]   ;;  %s1278_s5 = inlined_call_operand.hbm [shape: f32[8,128], index: 5, kind: output, shape index: {}]  }
   0x1   :  { %11 = vsyncpa [#allocation6], 0 }
   0x2   :  { %12 = vsyncpa [#allocation4], 0  ;;  %s1187_s18 = smov [#allocation5]  }
   0x3   :  { %s28_s19 = sshll.u32 %s1187_s18, 4  ;;  %s29_s19 = int_to_ptr.vmem [resolvable:$true] %s28_s19 }
   0x4   :  { %s1109_s20 = scalar_lea.vmem %s29_s19, 7168  ;;  %p1114_p1 = scmp.lt.s32.totalorder %s29_s19, %s29_s19 }
   0x5   :  { %p1110_p0 = scmp.ne.s32.totalorder %s29_s19, %s1109_s20  ;;  %p1115_p2 = scmp.lt.s32.totalorder %s1109_s20, %s1109_s20 }
   0x7   :  { %p1116_p3 = por %p1115_p2, %p1114_p1 }
   0x9   :  { %p1117_p4 = pnand %p1116_p3, %p1110_p0 }
   0xb   :  { %1120 = shalt.err (!%p1117_p4)
}
   0xc   :  { %s1188_s21 = smov 64   ;;  %s1189_s22 = smov 4  }
   0xd   :  { %34 = dma.hbm_to_vmem [thread:$0]  %s1274_s1, 7168, %s29_s19, [#allocation6], %s1188_s21, %s1188_s21, %s1189_s22  }
   0xe   :  { %s1190_s25 = smov [#allocation2]   ;;  %s1191_s27 = smov [#allocation7]  }
   0xf   :  { %s19_s26 = sshll.u32 %s1190_s25, 4  ;;  %s42_s28 = sshll.u32 %s1191_s27, 4  ;;  %s20_s26 = int_to_ptr.vmem [resolvable:$true] %s19_s26  ;;  %s43_s28 = int_to_ptr.vmem [resolvable:$true] %s42_s28 }
  0x10   :  { %s1129_s29 = scalar_lea.vmem %s20_s26, 448  ;;  %p1134_p6 = scmp.lt.s32.totalorder %s20_s26, %s20_s26 }
  0x11   :  { %p1130_p5 = scmp.ne.s32.totalorder %s20_s26, %s1129_s29  ;;  %p1135_p7 = scmp.lt.s32.totalorder %s1129_s29, %s1129_s29 }
  0x13   :  { %p1136_p8 = por %p1135_p7, %p1134_p6 }
  0x15   :  { %p1137_p9 = pnand %p1136_p8, %p1130_p5 }
  0x17   :  { %1140 = shalt.err (!%p1137_p9)
}
  0x18   :  { %22 = dma.hbm_to_vmem [thread:$0]  %s1273_s0, 448, %s20_s26, [#allocation3]  }
  0x19   :  { %s1149_s7 = scalar_lea.vmem %s43_s28, 2048  ;;  %p1154_p11 = scmp.lt.s32.totalorder %s43_s28, %s43_s28 }
  0x1a   :  { %p1150_p10 = scmp.ne.s32.totalorder %s43_s28, %s1149_s7  ;;  %p1155_p12 = scmp.lt.s32.totalorder %s1149_s7, %s1149_s7 }
  0x1c   :  { %p1156_p13 = por %p1155_p12, %p1154_p11 }
  0x1e   :  { %p1157_p0 = pnand %p1156_p13, %p1150_p10 }
  0x20   :  { %1160 = shalt.err (!%p1157_p0)
}
  0x21   :  { %s1192_s1 = smov 128   ;;  %s1193_s8 = smov 8  }
  0x22   :  { %48 = dma.hbm_to_vmem [thread:$0]  %s1276_s3, 2048, %s43_s28, [#allocation6], %s1192_s1, %s1192_s1, %s1193_s8  }
  0x23   :  { %1181 = dma.done.wait [#allocation3], 448  }
  0x24   :  { %1182 = vsyncadd [#allocation3], 4294966848 }
  0x25   :  { %1183 = dma.done.wait [#allocation6], 9216  }
  0x26   :  { %1184 = vsyncadd [#allocation6], 4294958080  ;;  %v1038_v0 = vld [vmem:[#allocation5 + $0x78] sm:$0xff]   ;;  %v1042_v4 = vld [vmem:[#allocation5 + $0x70] sm:$0xff]   ;;  %v1194_v39 = vmov 0.0   ;;  %vm1195_vm0 = vmmov 0  }
  0x27   :  { %v1039_v1 = vld [vmem:[#allocation5 + $0xf8] sm:$0xff]   ;;  %881 = vmatprep.subr.bf16.mxu0 %v1038_v0  ;;  %v1043_v5 = vld [vmem:[#allocation5 + $0xf0] sm:$0xff]   ;;  %v1046_v8 = vld [vmem:[#allocation5 + $0x68] sm:$0xff]  }
  0x28   :  { %v1040_v2 = vld [vmem:[#allocation5 + $0x38] sm:$0xff]   ;;  %903 = vmatprep.subr.bf16.mxu1 %v1039_v1  ;;  %v1044_v6 = vld [vmem:[#allocation5 + $0x30] sm:$0xff]   ;;  %v1047_v9 = vld [vmem:[#allocation5 + $0xe8] sm:$0xff]  }
  0x29   :  { %v1041_v3 = vld [vmem:[#allocation5 + $0xb8] sm:$0xff]   ;;  %882 = vmatpush3.bf16.msra.mxu0 %v1040_v2  ;;  %v1045_v7 = vld [vmem:[#allocation5 + $0xb0] sm:$0xff]   ;;  %v1048_v10 = vld [vmem:[#allocation5 + $0x28] sm:$0xff]  }
  0x2a   :  { %904 = vmatpush3.bf16.msra.mxu1 %v1041_v3  ;;  %883 = vmatprep.subr.bf16.mxu0 %v1042_v4  ;;  %v1049_v11 = vld [vmem:[#allocation5 + $0xa8] sm:$0xff]   ;;  %v1050_v12 = vld [vmem:[#allocation5 + $0x60] sm:$0xff]   ;;  %v1054_v16 = vld [vmem:[#allocation5 + $0x58] sm:$0xff]  }
  0x2b   :  { %905 = vmatprep.subr.bf16.mxu1 %v1043_v5  ;;  %v1051_v13 = vld [vmem:[#allocation5 + $0xe0] sm:$0xff]   ;;  %v1055_v17 = vld [vmem:[#allocation5 + $0xd8] sm:$0xff]   ;;  %v1058_v20 = vld [vmem:[#allocation5 + $0x50] sm:$0xff]  }
  0x2c   :  { %v1052_v14 = vld [vmem:[#allocation5 + $0x20] sm:$0xff]   ;;  %v1056_v18 = vld [vmem:[#allocation5 + $0x18] sm:$0xff]   ;;  %v1059_v21 = vld [vmem:[#allocation5 + $0xd0] sm:$0xff]  }
  0x2d   :  { %884 = vmatpush3.bf16.msra.mxu0 %v1044_v6  ;;  %v1053_v15 = vld [vmem:[#allocation5 + $0xa0] sm:$0xff]   ;;  %v1057_v19 = vld [vmem:[#allocation5 + $0x98] sm:$0xff]   ;;  %v1060_v22 = vld [vmem:[#allocation5 + $0x10] sm:$0xff]  }
  0x2e   :  { %906 = vmatpush3.bf16.msra.mxu1 %v1045_v7  ;;  %885 = vmatprep.subr.bf16.mxu0 %v1046_v8  ;;  %v1061_v23 = vld [vmem:[#allocation5 + $0x90] sm:$0xff]   ;;  %v1062_v24 = vld [vmem:[#allocation5 + $0x48] sm:$0xff]   ;;  %v1066_v28 = vld [vmem:[#allocation5 + $0x40] sm:$0xff]  }
  0x2f   :  { %907 = vmatprep.subr.bf16.mxu1 %v1047_v9  ;;  %v1063_v25 = vld [vmem:[#allocation5 + $0xc8] sm:$0xff]   ;;  %v1067_v29 = vld [vmem:[#allocation5 + $0xc0] sm:$0xff]   ;;  %v1074_v38 = vld [vmem:[#allocation5 + $0x178] sm:$0xff]  }
  0x30   :  { %v1064_v26 = vld [vmem:[#allocation5 + $0x8] sm:$0xff]   ;;  %v1068_v30 = vld [vmem:[#allocation5] sm:$0xff]   ;;  %v1075_v40 = vld [vmem:[#allocation5 + $0x138] sm:$0xff]  }
  0x31   :  { %886 = vmatpush3.bf16.msra.mxu0 %v1048_v10  ;;  %v1065_v27 = vld [vmem:[#allocation5 + $0x88] sm:$0xff]   ;;  %v1069_v31 = vld [vmem:[#allocation5 + $0x80] sm:$0xff]   ;;  %v1076_v41 = vld [vmem:[#allocation5 + $0x1b8] sm:$0xff]  }
  0x32   :  { %908 = vmatpush3.bf16.msra.mxu1 %v1049_v11  ;;  %887 = vmatprep.subr.bf16.mxu0 %v1050_v12  ;;  %v61_v32 = vld [vmem:[#allocation2] sm:$0xff]  ;;  %v62_v33 = vld [vmem:[#allocation2 + $0x8] sm:$0xff]  ;;  %v1086_v51 = vld [vmem:[#allocation5 + $0x158] sm:$0xff]  }
  0x33   :  { %909 = vmatprep.subr.bf16.mxu1 %v1051_v13  ;;  %v817_v34 = vcombine.low %v61_v32, %v61_v32  ;;  %v818_v35 = vcombine.high %v61_v32, %v61_v32  ;;  %v819_v36 = vcombine.low %v62_v33, %v62_v33  ;;  %v820_v37 = vcombine.high %v62_v33, %v62_v33  ;;  %v1077_v42 = vld [vmem:[#allocation5 + $0x170] sm:$0xff]   ;;  %v1080_v45 = vld [vmem:[#allocation5 + $0x168] sm:$0xff]   ;;  %v1083_v48 = vld [vmem:[#allocation5 + $0x160] sm:$0xff]  }
  0x34   :  { %v1078_v43 = vld [vmem:[#allocation5 + $0x130] sm:$0xff]   ;;  %v1081_v46 = vld [vmem:[#allocation5 + $0x128] sm:$0xff]   ;;  %v1084_v49 = vld [vmem:[#allocation5 + $0x120] sm:$0xff]  }
  0x35   :  { %888 = vmatpush3.bf16.msra.mxu0 %v1052_v14  ;;  %577 = vmatprep.mubr.bf16.mxu0 %v818_v35  ;;  %v1079_v44 = vld [vmem:[#allocation5 + $0x1b0] sm:$0xff]   ;;  %v1082_v47 = vld [vmem:[#allocation5 + $0x1a8] sm:$0xff]   ;;  %v1085_v50 = vld [vmem:[#allocation5 + $0x1a0] sm:$0xff]  }
  0x36   :  { %910 = vmatpush3.bf16.msra.mxu1 %v1053_v15  ;;  %889 = vmatprep.subr.bf16.mxu0 %v1054_v16  ;;  %v1087_v52 = vld [vmem:[#allocation5 + $0x118] sm:$0xff]   ;;  %v1089_v54 = vld [vmem:[#allocation5 + $0x150] sm:$0xff]   ;;  %v1092_v57 = vld [vmem:[#allocation5 + $0x148] sm:$0xff]  }
  0x37   :  { %911 = vmatprep.subr.bf16.mxu1 %v1055_v17  ;;  %617 = vmatprep.mubr.bf16.mxu1 %v820_v37  ;;  %v1088_v53 = vld [vmem:[#allocation5 + $0x198] sm:$0xff]   ;;  %v1090_v55 = vld [vmem:[#allocation5 + $0x110] sm:$0xff]   ;;  %v1093_v59 = vld [vmem:[#allocation5 + $0x108] sm:$0xff]  }
  0x38   :  { %v1091_v56 = vld [vmem:[#allocation5 + $0x190] sm:$0xff]   ;;  %v1094_v61 = vld [vmem:[#allocation5 + $0x188] sm:$0xff]   ;;  %v1095_v62 = vld [vmem:[#allocation5 + $0x140] sm:$0xff]  }
  0x39   :  { %890 = vmatpush3.bf16.msra.mxu0 %v1056_v18  ;;  %v63_v58 = vld [vmem:[#allocation2 + $0x10] sm:$0xff]  ;;  %v1096_v63 = vld [vmem:[#allocation5 + $0x100] sm:$0xff]   ;;  %v1100_v2 = vld [vmem:[#allocation2 + $0x18] ss:$0 sps:$4 sm:$0xff]  }
  0x3a   :  { %912 = vmatpush3.bf16.msra.mxu1 %v1057_v19  ;;  %891 = vmatprep.subr.bf16.mxu0 %v1058_v20  ;;  %v822_v60 = vcombine.high %v63_v58, %v63_v58  ;;  %v1097_v0 = vld [vmem:[#allocation5 + $0x180] sm:$0xff]   ;;  %v821_v1 = vcombine.low %v63_v58, %v63_v58  ;;  %v721_v3 = vld [vmem:[#allocation7 + $0x78] sm:$0xff]  ;;  %v720_v4 = vld [vmem:[#allocation7 + $0x70] sm:$0xff] }
  0x3b   :  { %913 = vmatprep.subr.bf16.mxu1 %v1059_v21  ;;  %v719_v5 = vld [vmem:[#allocation7 + $0x68] sm:$0xff]  ;;  %v718_v6 = vld [vmem:[#allocation7 + $0x60] sm:$0xff]  ;;  %v717_v7 = vld [vmem:[#allocation7 + $0x58] sm:$0xff] }
  0x3c   :  { %v716_v8 = vld [vmem:[#allocation7 + $0x50] sm:$0xff]  ;;  %v715_v9 = vld [vmem:[#allocation7 + $0x48] sm:$0xff]  ;;  %v714_v10 = vld [vmem:[#allocation7 + $0x40] sm:$0xff] }
  0x3d   :  { %892 = vmatpush3.bf16.msra.mxu0 %v1060_v22  ;;  %v713_v11 = vld [vmem:[#allocation7 + $0x38] sm:$0xff]  ;;  %v712_v12 = vld [vmem:[#allocation7 + $0x30] sm:$0xff]  ;;  %v711_v13 = vld [vmem:[#allocation7 + $0x28] sm:$0xff] }
  0x3e   :  { %914 = vmatpush3.bf16.msra.mxu1 %v1061_v23  ;;  %893 = vmatprep.subr.bf16.mxu0 %v1062_v24  ;;  %v710_v14 = vld [vmem:[#allocation7 + $0x20] sm:$0xff]  ;;  %v709_v15 = vld [vmem:[#allocation7 + $0x18] sm:$0xff]  ;;  %v708_v16 = vld [vmem:[#allocation7 + $0x10] sm:$0xff] }
  0x3f   :  { %915 = vmatprep.subr.bf16.mxu1 %v1063_v25  ;;  %v707_v17 = vld [vmem:[#allocation7 + $0x8] sm:$0xff]  ;;  %v706_v18 = vld [vmem:[#allocation7] sm:$0xff] }
  0x41   :  { %894 = vmatpush3.bf16.msra.mxu0 %v1064_v26 }
  0x42   :  { %916 = vmatpush3.bf16.msra.mxu1 %v1065_v27  ;;  %895 = vmatprep.subr.bf16.mxu0 %v1066_v28  ;;  %v816_v28 = vld [vmem:[%s1275_s2] ss:$0 sm:$0xff]  ;;  %s1196_s2 = smov [#allocation8]  }
  0x43   :  { %917 = vmatprep.subr.bf16.mxu1 %v1067_v29  ;;  %s806_s13 = sshll.u32 %s1196_s2, 4  ;;  %s807_s13 = int_to_ptr.vmem [resolvable:$true] %s806_s13 }
  0x44   :  { %s1161_s14 = scalar_lea.vmem %s807_s13, 128  ;;  %p1166_p2 = scmp.lt.s32.totalorder %s807_s13, %s807_s13 }
  0x45   :  { %896 = vmatpush3.bf16.msra.mxu0 %v1068_v30  ;;  %p1162_p1 = scmp.ne.s32.totalorder %s807_s13, %s1161_s14  ;;  %p1167_p3 = scmp.lt.s32.totalorder %s1161_s14, %s1161_s14 }
  0x46   :  { %918 = vmatpush3.bf16.msra.mxu1 %v1069_v31  ;;  %925 = vmatprep.subr.bf16.mxu0 %v1074_v38 }
  0x47   :  { %973 = vmatprep.subr.bf16.mxu1 %v1194_v39  ;;  %p1168_p4 = por %p1167_p3, %p1166_p2 }
  0x48   :  { %578 = vmatmul.mubr.bf16.vlgmr.msra.gmra.mxu0 %v817_v34 }
  0x49   :  { %618 = vmatmul.mubr.bf16.vlgmr.msra.gmra.mxu1 %v819_v36  ;;  %926 = vmatpush3.bf16.msra.mxu0 %v1075_v40  ;;  %p1169_p5 = pnand %p1168_p4, %p1162_p1 }
  0x4a   :  { %974 = vmatpush3.bf16.msra.mxu1 %v1076_v41  ;;  %927 = vmatprep.subr.bf16.mxu0 %v1077_v42 }
  0x4b   :  { %975 = vmatprep.subr.bf16.mxu1 %v1194_v39  ;;  %989 = vmatprep.mubr.msk.bf16.mxu1 %vm1195_vm0, %v1194_v39 }
  0x4c   :  { %657 = vmatprep.mubr.bf16.mxu0 %v822_v60 }
  0x4d   :  { %928 = vmatpush3.bf16.msra.mxu0 %v1078_v43 }
  0x4e   :  { %976 = vmatpush3.bf16.msra.mxu1 %v1079_v44  ;;  %929 = vmatprep.subr.bf16.mxu0 %v1080_v45  ;;  %v880_v44 = vld [vmem:[%s1277_s4] ss:$0 sm:$0xff] }
  0x4f   :  { %977 = vmatprep.subr.bf16.mxu1 %v1194_v39 }
  0x51   :  { %930 = vmatpush3.bf16.msra.mxu0 %v1081_v46 }
  0x52   :  { %978 = vmatpush3.bf16.msra.mxu1 %v1082_v47  ;;  %931 = vmatprep.subr.bf16.mxu0 %v1083_v48 }
  0x53   :  { %979 = vmatprep.subr.bf16.mxu1 %v1194_v39 }
  0x55   :  { %932 = vmatpush3.bf16.msra.mxu0 %v1084_v49 }
  0x56   :  { %980 = vmatpush3.bf16.msra.mxu1 %v1085_v50  ;;  %933 = vmatprep.subr.bf16.mxu0 %v1086_v51 }
  0x57   :  { %981 = vmatprep.subr.bf16.mxu1 %v1194_v39 }
  0x59   :  { %934 = vmatpush3.bf16.msra.mxu0 %v1087_v52 }
  0x5a   :  { %982 = vmatpush3.bf16.msra.mxu1 %v1088_v53  ;;  %935 = vmatprep.subr.bf16.mxu0 %v1089_v54 }
  0x5b   :  { %983 = vmatprep.subr.bf16.mxu1 %v1194_v39 }
  0x5d   :  { %936 = vmatpush3.bf16.msra.mxu0 %v1090_v55 }
  0x5e   :  { %984 = vmatpush3.bf16.msra.mxu1 %v1091_v56  ;;  %937 = vmatprep.subr.bf16.mxu0 %v1092_v57 }
  0x5f   :  { %985 = vmatprep.subr.bf16.mxu1 %v1194_v39 }
  0x61   :  { %938 = vmatpush3.bf16.msra.mxu0 %v1093_v59 }
  0x62   :  { %986 = vmatpush3.bf16.msra.mxu1 %v1094_v61  ;;  %939 = vmatprep.subr.bf16.mxu0 %v1095_v62 }
  0x63   :  { %987 = vmatprep.subr.bf16.mxu1 %v1194_v39 }
  0x65   :  { %940 = vmatpush3.bf16.msra.mxu0 %v1096_v63 }
  0x66   :  { %988 = vmatpush3.bf16.msra.mxu1 %v1097_v0  ;;  %993 = vmatprep.subr.mxu0 %v1194_v39 }
  0x68   :  { %658 = vmatmul.mubr.bf16.vlgmr.msra.gmra.mxu0 %v821_v1 }
  0x69   :  { %990 = vmatmul.mubr.bf16.vlgmr.msra.gmra.mxu1 %v1100_v2  ;;  %1025 = vmatprep.mubr.msk.f32.mxu0 %vm1195_vm0, %v1194_v39 }
  0x6a   :  { %994 = vmatpush3.msra.mxu0 %v721_v3 }
  0x6b   :  { %995 = vmatprep.subr.mxu0 %v1194_v39 }
  0x6c   :  { %996 = vmatpush3.msra.mxu0 %v720_v4 }
  0x6d   :  { %997 = vmatprep.subr.mxu0 %v1194_v39 }
  0x6e   :  { %998 = vmatpush3.msra.mxu0 %v719_v5 }
  0x6f   :  { %999 = vmatprep.subr.mxu0 %v1194_v39 }
  0x70   :  { %1000 = vmatpush3.msra.mxu0 %v718_v6 }
  0x71   :  { %1001 = vmatprep.subr.mxu0 %v1194_v39 }
  0x72   :  { %1002 = vmatpush3.msra.mxu0 %v717_v7 }
  0x73   :  { %1003 = vmatprep.subr.mxu0 %v1194_v39 }
  0x74   :  { %1004 = vmatpush3.msra.mxu0 %v716_v8 }
  0x75   :  { %1005 = vmatprep.subr.mxu0 %v1194_v39 }
  0x76   :  { %1006 = vmatpush3.msra.mxu0 %v715_v9 }
  0x77   :  { %1007 = vmatprep.subr.mxu0 %v1194_v39 }
  0x78   :  { %1008 = vmatpush3.msra.mxu0 %v714_v10 }
  0x79   :  { %1009 = vmatprep.subr.mxu0 %v1194_v39 }
  0x7a   :  { %1010 = vmatpush3.msra.mxu0 %v713_v11 }
  0x7b   :  { %1011 = vmatprep.subr.mxu0 %v1194_v39 }
  0x7c   :  { %1012 = vmatpush3.msra.mxu0 %v712_v12 }
  0x7d   :  { %1013 = vmatprep.subr.mxu0 %v1194_v39 }
  0x7e   :  { %1014 = vmatpush3.msra.mxu0 %v711_v13 }
  0x7f   :  { %1015 = vmatprep.subr.mxu0 %v1194_v39 }
  0x80   :  { %1016 = vmatpush3.msra.mxu0 %v710_v14 }
  0x81   :  { %1017 = vmatprep.subr.mxu0 %v1194_v39 }
  0x82   :  { %1018 = vmatpush3.msra.mxu0 %v709_v15 }
  0x83   :  { %1019 = vmatprep.subr.mxu0 %v1194_v39 }
  0x84   :  { %1020 = vmatpush3.msra.mxu0 %v708_v16 }
  0x85   :  { %1021 = vmatprep.subr.mxu0 %v1194_v39 }
  0x86   :  { %1022 = vmatpush3.msra.mxu0 %v707_v17 }
  0x87   :  { %1023 = vmatprep.subr.mxu0 %v1194_v39 }
  0x88   :  { %1024 = vmatpush3.msra.mxu0 %v706_v18 }
 0x108   :  { %v897_v19 = vpop.f32.mrf.mxu0 }
 0x109   :  { %v919_v20 = vpop.f32.mrf.mxu1 }
 0x10a   :  { %v898_v21 = vpop.f32.mrf.mxu0 }
 0x10b   :  { %v920_v22 = vpop.f32.mrf.mxu1  ;;  %v899_v27 = vadd.f32 %v898_v21, %v897_v19 }
 0x10c   :  { %v900_v23 = vpop.f32.mrf.mxu0  ;;  %v921_v30 = vadd.f32 %v920_v22, %v919_v20 }
 0x10d   :  { %v922_v24 = vpop.f32.mrf.mxu1  ;;  %v580_v29 = vadd.f32 %v899_v27, %v816_v28 }
 0x10e   :  { %v901_v25 = vpop.f32.mrf.mxu0 }
 0x10f   :  { %v923_v26 = vpop.f32.mrf.mxu1  ;;  %v620_v34 = vadd.f32 %v921_v30, %v580_v29 }
 0x128   :  { %v941_v31 = vpop.f32.mrf.mxu0 }
 0x129   :  { %v699_v32 = vpop.f32.mrf.mxu1 }
 0x12a   :  { %v942_v33 = vpop.f32.mrf.mxu0 }
 0x12b   :  { %v943_v35 = vadd.f32 %v942_v33, %v941_v31  ;;  %v991_v36 = vpop.f32.mrf.mxu1 }
 0x12c   :  { %v944_v37 = vpop.f32.mrf.mxu0 }
 0x12d   :  { %v660_v38 = vadd.f32 %v943_v35, %v620_v34  ;;  %v702_v39 = vpop.f32.mrf.mxu1 }
 0x12e   :  { %v945_v40 = vpop.f32.mrf.mxu0 }
 0x12f   :  { %v700_v41 = vadd.f32 %v699_v32, %v660_v38  ;;  %v992_v42 = vpop.f32.mrf.mxu1 }
 0x131   :  { %v705_v43 = vmax.f32 %v700_v41, 0.0 }
 0x133   :  { %1026 = vmatmul.mubr.f32.vlgmr.msra.gmra.mxu0 %v705_v43 }
 0x1f3   :  { %v795_v45 = vpop.f32.mrf.mxu0 }
 0x1f4   :  { %v796_v46 = vadd.f32 %v880_v44, %v795_v45 }
 0x1f5   :  { %v1027_v47 = vpop.f32.mrf.mxu0 }
 0x1f6   :  { %799 = vst [vmem:[#allocation8] sm:$0xff] %v796_v46 }
 0x1f7   :  { %1172 = shalt.err (!%p1169_p5)
}
 0x1f8   :  { %809 = dma.vmem_to_hbm [thread:$0]  %s807_s13, 128, %s1278_s5, [#allocation4]  }
 0x1f9   :  { %1185 = dma.done.wait [#allocation4], 128  }
 0x1fa   :  { %1186 = vsyncadd [#allocation4], 4294967168 }
 0x1fb   :  { %813 = vsyncpa [#allocation3], 1 }
 0x1fc   :  { %814 = vsyncpa [#allocation6], 1 }
 0x1fd   :  { %815 = vsyncpa [#allocation4], 1 }

</bundles_post_ra>
